<compile_context>
chip_gen: v7x
topology: tpu7x:2x2x1
jax: 0.10.0
libtpu: 0.0.40
codegen_flags: <defaults>
</compile_context>

<pallas_src>
import jax
import jax.numpy as jnp
from jax import lax
from jax.experimental import pallas as pl
from jax.experimental.pallas import tpu as pltpu

BN_EPS = 1e-5


def _conv_bn_relu(h3d, pad_ref, w_ref, bgb_ref):
    """Conv1d(k=3, s=1, p=1) + BatchNorm1d(training stats) + ReLU.

    h3d:     (B, T, C) f32 layer input (a value, already loaded).
    pad_ref: (B, T+2, C) f32 VMEM scratch (zero-padded im2col source).
    w_ref:   (3*C, Cout) bf16 packed conv weight, rows = [tap0 | tap1 | tap2].
    bgb_ref: (3, Cout) f32, rows = [conv bias, bn gamma, bn beta].
    """
    b, t, c = h3d.shape
    cout = w_ref.shape[1]

    # Zero-padded copy: pad[:, i, :] = h[:, i-1, :] for i in [1, T], zeros at both ends.
    zrow = jnp.zeros((b, 1, c), pad_ref.dtype)
    pad_ref[:, 0:1, :] = zrow
    pad_ref[:, t + 1:t + 2, :] = zrow
    pad_ref[:, 1:t + 1, :] = h3d

    # Three overlapping sublane windows = the three conv taps: x[t-1], x[t], x[t+1].
    left = pad_ref[:, 0:t, :]
    mid = pad_ref[:, 1:t + 1, :]
    right = pad_ref[:, 2:t + 2, :]

    # im2col -> ONE MXU matmul per layer (bf16 operands, f32 accumulation).
    im2col = jnp.concatenate([left, mid, right], axis=-1).reshape(b * t, 3 * c)
    z = jnp.dot(im2col.astype(jnp.bfloat16), w_ref[...],
                preferred_element_type=jnp.float32)                # (B*T, Cout) f32
    z = z + bgb_ref[0:1, :]                                        # conv bias

    # BatchNorm1d training-mode batch statistics over (B*T) rows per channel.
    # Centered form avoids E[x^2] - E[x]^2 cancellation.
    mean = jnp.mean(z, axis=0, keepdims=True)                      # (1, Cout)
    cen = z - mean
    var = jnp.mean(cen * cen, axis=0, keepdims=True)
    scale = lax.rsqrt(var + BN_EPS) * bgb_ref[1:2, :]              # fold rsqrt * gamma
    h = jnp.maximum(cen * scale + bgb_ref[2:3, :], 0.0)
    return h.reshape(b, t, cout)


def kin_kernel(x_ref, w1_ref, bgb1_ref, w2_ref, bgb2_ref, fcwb_ref, out_ref,
               pad1_ref, pad2_ref):
    h1 = _conv_bn_relu(x_ref[...], pad1_ref, w1_ref, bgb1_ref)     # (B, T, H)
    h2 = _conv_bn_relu(h1, pad2_ref, w2_ref, bgb2_ref)             # (B, T, 2H)

    pooled = jnp.mean(h2, axis=1)                                  # AdaptiveAvgPool1d(1) -> (B, 2H)

    h2c = h2.shape[-1]
    w_fc = fcwb_ref[0:h2c, :]                                      # (2H, OUT)
    b_fc = fcwb_ref[h2c:h2c + 1, :]                                # (1, OUT)
    out = jnp.dot(pooled, w_fc, preferred_element_type=jnp.float32) + b_fc
    out_ref[...] = out.astype(out_ref.dtype)


def conv1d_kinematic_forward(x, packed):
    """x: (B, T, C_in) f32; packed: dict from pack_params()."""
    b, t, cin = x.shape
    hid = packed["w1"].shape[1]
    out_dim = packed["fcwb"].shape[1]
    args = (x, packed["w1"], packed["bgb1"], packed["w2"], packed["bgb2"],
            packed["fcwb"])
    fn = pl.pallas_call(
        kin_kernel,
        out_shape=jax.ShapeDtypeStruct((b, out_dim), jnp.float32),
        in_specs=[pl.BlockSpec(memory_space=pltpu.MemorySpace.VMEM)] * len(args),
        out_specs=pl.BlockSpec(memory_space=pltpu.MemorySpace.VMEM),
        scratch_shapes=[
            pltpu.VMEM((b, t + 2, cin), jnp.float32),   # zero-padded layer-1 input
            pltpu.VMEM((b, t + 2, hid), jnp.float32),   # zero-padded layer-2 input
        ],
        compiler_params=pltpu.CompilerParams(vmem_limit_bytes=32 * 1024 * 1024),
    )
    return fn(*args)


def make_raw_params(key, input_dim, output_dim, hidden_dim=32):
    """PyTorch-shaped parameters: conv (Cout, Cin, K), fc (Out, In)."""
    ks = jax.random.split(key, 8)
    h2 = hidden_dim * 2
    return {
        "conv1_w": 0.1 * jax.random.normal(ks[0], (hidden_dim, input_dim, 3), jnp.float32),
        "conv1_b": 0.1 * jax.random.normal(ks[1], (hidden_dim,), jnp.float32),
        "conv2_w": 0.1 * jax.random.normal(ks[2], (h2, hidden_dim, 3), jnp.float32),
        "conv2_b": 0.1 * jax.random.normal(ks[3], (h2,), jnp.float32),
        "fc_w": 0.1 * jax.random.normal(ks[4], (output_dim, h2), jnp.float32),
        "fc_b": 0.1 * jax.random.normal(ks[5], (output_dim,), jnp.float32),
        "g1": 1.0 + 0.1 * jax.random.normal(ks[6], (hidden_dim,), jnp.float32),
        "be1": jnp.zeros((hidden_dim,), jnp.float32),
        "g2": 1.0 + 0.1 * jax.random.normal(ks[7], (h2,), jnp.float32),
        "be2": jnp.zeros((h2,), jnp.float32),
    }


def pack_params(raw):
    """Pack PyTorch-shaped params into the 6 kernel inputs."""
    def pack_conv(w):  # (Cout, Cin, K) -> (K*Cin, Cout), tap-major rows
        return jnp.concatenate([w[:, :, k].T for k in range(w.shape[-1])], axis=0)

    return {
        "w1": pack_conv(raw["conv1_w"]).astype(jnp.bfloat16),
        "bgb1": jnp.stack([raw["conv1_b"], raw["g1"], raw["be1"]], axis=0),
        "w2": pack_conv(raw["conv2_w"]).astype(jnp.bfloat16),
        "bgb2": jnp.stack([raw["conv2_b"], raw["g2"], raw["be2"]], axis=0),
        "fcwb": jnp.concatenate([raw["fc_w"].T, raw["fc_b"][None, :]], axis=0),
    }


def _reference_forward(x_btc, raw):
    """Plain-JAX f32 reference that follows the PyTorch module exactly."""
    x = jnp.transpose(x_btc, (0, 2, 1))                            # (B, Cin, T)

    def block(h, w, b_, g, be):
        z = lax.conv_general_dilated(h, w, window_strides=(1,), padding=[(1, 1)],
                                     dimension_numbers=("NCH", "OIH", "NCH"))
        z = z + b_[None, :, None]
        m = jnp.mean(z, axis=(0, 2), keepdims=True)
        v = jnp.mean((z - m) ** 2, axis=(0, 2), keepdims=True)
        z = (z - m) * lax.rsqrt(v + BN_EPS) * g[None, :, None] + be[None, :, None]
        return jnp.maximum(z, 0.0)

    h1 = block(x, raw["conv1_w"], raw["conv1_b"], raw["g1"], raw["be1"])
    h2 = block(h1, raw["conv2_w"], raw["conv2_b"], raw["g2"], raw["be2"])
    pooled = jnp.mean(h2, axis=2)                                  # (B, 2H)
    return pooled @ raw["fc_w"].T + raw["fc_b"]


if __name__ == "__main__":
    B, T, IN, HID, OUT = 2, 16, 8, 32, 4
    key = jax.random.PRNGKey(0)
    kx, kp = jax.random.split(key)
    x = jax.random.normal(kx, (B, T, IN), jnp.float32)             # (batch, time, features)
    raw = make_raw_params(kp, IN, OUT, HID)
    packed = pack_params(raw)

    out = conv1d_kinematic_forward(x, packed)
    out = jax.block_until_ready(out)

    ref = _reference_forward(x, raw)
    assert out.shape == (B, OUT)
    # bf16 MXU operands + f32 accumulation vs. the full-f32 reference.
    assert jnp.allclose(out, ref, rtol=2e-2, atol=2e-2), (out, ref)

    print("KERNEL_OK")
</pallas_src>

<mosaic_0001>
module attributes {stable_mosaic.version = 11 : i64} {
  func.func @kin_kernel(%arg0: memref<2x16x8xf32, #tpu.memory_space<vmem>>, %arg1: memref<24x32xbf16, #tpu.memory_space<vmem>>, %arg2: memref<3x32xf32, #tpu.memory_space<vmem>>, %arg3: memref<96x64xbf16, #tpu.memory_space<vmem>>, %arg4: memref<3x64xf32, #tpu.memory_space<vmem>>, %arg5: memref<65x4xf32, #tpu.memory_space<vmem>>, %arg6: memref<2x4xf32, #tpu.memory_space<vmem>>, %arg7: memref<2x18x8xf32, #tpu.memory_space<vmem>>, %arg8: memref<2x18x32xf32, #tpu.memory_space<vmem>>) attributes {dimension_semantics = [], scalar_prefetch = 0 : i64, scratch_operands = 2 : i64, tpu.core_type = #tpu.core_type<tc>} {
    %c0 = arith.constant 0 : index
    %c0_0 = arith.constant 0 : index
    %c0_1 = arith.constant 0 : index
    %0 = vector.load %arg0[%c0, %c0_0, %c0_1] : memref<2x16x8xf32, #tpu.memory_space<vmem>>, vector<2x16x8xf32>
    %cst = arith.constant 0.000000e+00 : f32
    %1 = vector.broadcast %cst : f32 to vector<2x1x8xf32>
    %c0_2 = arith.constant 0 : index
    %c0_3 = arith.constant 0 : index
    %c0_4 = arith.constant 0 : index
    %2 = vector.load %arg7[%c0_2, %c0_3, %c0_4] : memref<2x18x8xf32, #tpu.memory_space<vmem>>, vector<2x1x8xf32>
    tpu.vector_store %arg7[%c0_2, %c0_3, %c0_4], %1 {strides = array<i32>} : memref<2x18x8xf32, #tpu.memory_space<vmem>>, vector<2x1x8xf32>,
    %c0_5 = arith.constant 0 : index
    %c17 = arith.constant 17 : index
    %c0_6 = arith.constant 0 : index
    %3 = vector.load %arg7[%c0_5, %c17, %c0_6] : memref<2x18x8xf32, #tpu.memory_space<vmem>>, vector<2x1x8xf32>
    tpu.vector_store %arg7[%c0_5, %c17, %c0_6], %1 {strides = array<i32>} : memref<2x18x8xf32, #tpu.memory_space<vmem>>, vector<2x1x8xf32>,
    %c0_7 = arith.constant 0 : index
    %c1 = arith.constant 1 : index
    %c0_8 = arith.constant 0 : index
    %4 = vector.load %arg7[%c0_7, %c1, %c0_8] : memref<2x18x8xf32, #tpu.memory_space<vmem>>, vector<2x16x8xf32>
    tpu.vector_store %arg7[%c0_7, %c1, %c0_8], %0 {strides = array<i32>} : memref<2x18x8xf32, #tpu.memory_space<vmem>>, vector<2x16x8xf32>,
    %c0_9 = arith.constant 0 : index
    %c0_10 = arith.constant 0 : index
    %c0_11 = arith.constant 0 : index
    %5 = vector.load %arg7[%c0_9, %c0_10, %c0_11] : memref<2x18x8xf32, #tpu.memory_space<vmem>>, vector<2x16x8xf32>
    %c0_12 = arith.constant 0 : index
    %c1_13 = arith.constant 1 : index
    %c0_14 = arith.constant 0 : index
    %6 = vector.load %arg7[%c0_12, %c1_13, %c0_14] : memref<2x18x8xf32, #tpu.memory_space<vmem>>, vector<2x16x8xf32>
    %c0_15 = arith.constant 0 : index
    %c2 = arith.constant 2 : index
    %c0_16 = arith.constant 0 : index
    %7 = vector.load %arg7[%c0_15, %c2, %c0_16] : memref<2x18x8xf32, #tpu.memory_space<vmem>>, vector<2x16x8xf32>
    %8 = tpu.concatenate %5, %6, %7 in 2 : vector<2x16x8xf32>, vector<2x16x8xf32>, vector<2x16x8xf32> -> vector<2x16x24xf32>
    %9 = vector.shape_cast %8 : vector<2x16x24xf32> to vector<32x24xf32>
    %10 = arith.truncf %9 : vector<32x24xf32> to vector<32x24xbf16>
    %c0_17 = arith.constant 0 : index
    %c0_18 = arith.constant 0 : index
    %11 = vector.load %arg1[%c0_17, %c0_18] : memref<24x32xbf16, #tpu.memory_space<vmem>>, vector<24x32xbf16>
    %cst_19 = arith.constant dense<0.000000e+00> : vector<32x32xf32>
    %12 = tpu.matmul %10, %11, %cst_19 {dimension_numbers = #tpu.dot_dimension_numbers<[1], [0], [0], [1], [0, 0, 1, 1], [], []>} : vector<32x24xbf16>, vector<24x32xbf16>, vector<32x32xf32> -> vector<32x32xf32>
    %c0_20 = arith.constant 0 : index
    %c0_21 = arith.constant 0 : index
    %13 = vector.load %arg2[%c0_20, %c0_21] : memref<3x32xf32, #tpu.memory_space<vmem>>, vector<1x32xf32>
    %14 = vector.broadcast %13 : vector<1x32xf32> to vector<32x32xf32>
    %15 = arith.addf %12, %14 : vector<32x32xf32>
    %cst_22 = arith.constant dense<0.000000e+00> : vector<32xf32>
    %16 = vector.multi_reduction <add>, %15, %cst_22 [0] : vector<32x32xf32> to vector<32xf32>
    %17 = vector.shape_cast %16 : vector<32xf32> to vector<1x32xf32>
    %cst_23 = arith.constant 3.200000e+01 : f32
    %18 = vector.broadcast %cst_23 : f32 to vector<1x32xf32>
    %19 = arith.divf %17, %18 : vector<1x32xf32>
    %20 = vector.broadcast %19 : vector<1x32xf32> to vector<32x32xf32>
    %21 = arith.subf %15, %20 : vector<32x32xf32>
    %22 = arith.mulf %21, %21 : vector<32x32xf32>
    %cst_24 = arith.constant dense<0.000000e+00> : vector<32xf32>
    %23 = vector.multi_reduction <add>, %22, %cst_24 [0] : vector<32x32xf32> to vector<32xf32>
    %24 = vector.shape_cast %23 : vector<32xf32> to vector<1x32xf32>
    %cst_25 = arith.constant 3.200000e+01 : f32
    %25 = vector.broadcast %cst_25 : f32 to vector<1x32xf32>
    %26 = arith.divf %24, %25 : vector<1x32xf32>
    %cst_26 = arith.constant 9.99999974E-6 : f32
    %27 = vector.broadcast %cst_26 : f32 to vector<1x32xf32>
    %28 = arith.addf %26, %27 : vector<1x32xf32>
    %29 = math.rsqrt %28 : vector<1x32xf32>
    %c1_27 = arith.constant 1 : index
    %c0_28 = arith.constant 0 : index
    %30 = vector.load %arg2[%c1_27, %c0_28] : memref<3x32xf32, #tpu.memory_space<vmem>>, vector<1x32xf32>
    %31 = arith.mulf %29, %30 : vector<1x32xf32>
    %32 = vector.broadcast %31 : vector<1x32xf32> to vector<32x32xf32>
    %33 = arith.mulf %21, %32 : vector<32x32xf32>
    %c2_29 = arith.constant 2 : index
    %c0_30 = arith.constant 0 : index
    %34 = vector.load %arg2[%c2_29, %c0_30] : memref<3x32xf32, #tpu.memory_space<vmem>>, vector<1x32xf32>
    %35 = vector.broadcast %34 : vector<1x32xf32> to vector<32x32xf32>
    %36 = arith.addf %33, %35 : vector<32x32xf32>
    %cst_31 = arith.constant 0.000000e+00 : f32
    %37 = vector.broadcast %cst_31 : f32 to vector<32x32xf32>
    %38 = arith.maximumf %36, %37 : vector<32x32xf32>
    %39 = vector.shape_cast %38 : vector<32x32xf32> to vector<2x16x32xf32>
    %cst_32 = arith.constant 0.000000e+00 : f32
    %40 = vector.broadcast %cst_32 : f32 to vector<2x1x32xf32>
    %c0_33 = arith.constant 0 : index
    %c0_34 = arith.constant 0 : index
    %c0_35 = arith.constant 0 : index
    %41 = vector.load %arg8[%c0_33, %c0_34, %c0_35] : memref<2x18x32xf32, #tpu.memory_space<vmem>>, vector<2x1x32xf32>
    tpu.vector_store %arg8[%c0_33, %c0_34, %c0_35], %40 {strides = array<i32>} : memref<2x18x32xf32, #tpu.memory_space<vmem>>, vector<2x1x32xf32>,
    %c0_36 = arith.constant 0 : index
    %c17_37 = arith.constant 17 : index
    %c0_38 = arith.constant 0 : index
    %42 = vector.load %arg8[%c0_36, %c17_37, %c0_38] : memref<2x18x32xf32, #tpu.memory_space<vmem>>, vector<2x1x32xf32>
    tpu.vector_store %arg8[%c0_36, %c17_37, %c0_38], %40 {strides = array<i32>} : memref<2x18x32xf32, #tpu.memory_space<vmem>>, vector<2x1x32xf32>,
    %c0_39 = arith.constant 0 : index
    %c1_40 = arith.constant 1 : index
    %c0_41 = arith.constant 0 : index
    %43 = vector.load %arg8[%c0_39, %c1_40, %c0_41] : memref<2x18x32xf32, #tpu.memory_space<vmem>>, vector<2x16x32xf32>
    tpu.vector_store %arg8[%c0_39, %c1_40, %c0_41], %39 {strides = array<i32>} : memref<2x18x32xf32, #tpu.memory_space<vmem>>, vector<2x16x32xf32>,
    %c0_42 = arith.constant 0 : index
    %c0_43 = arith.constant 0 : index
    %c0_44 = arith.constant 0 : index
    %44 = vector.load %arg8[%c0_42, %c0_43, %c0_44] : memref<2x18x32xf32, #tpu.memory_space<vmem>>, vector<2x16x32xf32>
    %c0_45 = arith.constant 0 : index
    %c1_46 = arith.constant 1 : index
    %c0_47 = arith.constant 0 : index
    %45 = vector.load %arg8[%c0_45, %c1_46, %c0_47] : memref<2x18x32xf32, #tpu.memory_space<vmem>>, vector<2x16x32xf32>
    %c0_48 = arith.constant 0 : index
    %c2_49 = arith.constant 2 : index
    %c0_50 = arith.constant 0 : index
    %46 = vector.load %arg8[%c0_48, %c2_49, %c0_50] : memref<2x18x32xf32, #tpu.memory_space<vmem>>, vector<2x16x32xf32>
    %47 = tpu.concatenate %44, %45, %46 in 2 : vector<2x16x32xf32>, vector<2x16x32xf32>, vector<2x16x32xf32> -> vector<2x16x96xf32>
    %48 = vector.shape_cast %47 : vector<2x16x96xf32> to vector<32x96xf32>
    %49 = arith.truncf %48 : vector<32x96xf32> to vector<32x96xbf16>
    %c0_51 = arith.constant 0 : index
    %c0_52 = arith.constant 0 : index
    %50 = vector.load %arg3[%c0_51, %c0_52] : memref<96x64xbf16, #tpu.memory_space<vmem>>, vector<96x64xbf16>
    %cst_53 = arith.constant dense<0.000000e+00> : vector<32x64xf32>
    %51 = tpu.matmul %49, %50, %cst_53 {dimension_numbers = #tpu.dot_dimension_numbers<[1], [0], [0], [1], [0, 0, 1, 1], [], []>} : vector<32x96xbf16>, vector<96x64xbf16>, vector<32x64xf32> -> vector<32x64xf32>
    %c0_54 = arith.constant 0 : index
    %c0_55 = arith.constant 0 : index
    %52 = vector.load %arg4[%c0_54, %c0_55] : memref<3x64xf32, #tpu.memory_space<vmem>>, vector<1x64xf32>
    %53 = vector.broadcast %52 : vector<1x64xf32> to vector<32x64xf32>
    %54 = arith.addf %51, %53 : vector<32x64xf32>
    %cst_56 = arith.constant dense<0.000000e+00> : vector<64xf32>
    %55 = vector.multi_reduction <add>, %54, %cst_56 [0] : vector<32x64xf32> to vector<64xf32>
    %56 = vector.shape_cast %55 : vector<64xf32> to vector<1x64xf32>
    %cst_57 = arith.constant 3.200000e+01 : f32
    %57 = vector.broadcast %cst_57 : f32 to vector<1x64xf32>
    %58 = arith.divf %56, %57 : vector<1x64xf32>
    %59 = vector.broadcast %58 : vector<1x64xf32> to vector<32x64xf32>
    %60 = arith.subf %54, %59 : vector<32x64xf32>
    %61 = arith.mulf %60, %60 : vector<32x64xf32>
    %cst_58 = arith.constant dense<0.000000e+00> : vector<64xf32>
    %62 = vector.multi_reduction <add>, %61, %cst_58 [0] : vector<32x64xf32> to vector<64xf32>
    %63 = vector.shape_cast %62 : vector<64xf32> to vector<1x64xf32>
    %cst_59 = arith.constant 3.200000e+01 : f32
    %64 = vector.broadcast %cst_59 : f32 to vector<1x64xf32>
    %65 = arith.divf %63, %64 : vector<1x64xf32>
    %cst_60 = arith.constant 9.99999974E-6 : f32
    %66 = vector.broadcast %cst_60 : f32 to vector<1x64xf32>
    %67 = arith.addf %65, %66 : vector<1x64xf32>
    %68 = math.rsqrt %67 : vector<1x64xf32>
    %c1_61 = arith.constant 1 : index
    %c0_62 = arith.constant 0 : index
    %69 = vector.load %arg4[%c1_61, %c0_62] : memref<3x64xf32, #tpu.memory_space<vmem>>, vector<1x64xf32>
    %70 = arith.mulf %68, %69 : vector<1x64xf32>
    %71 = vector.broadcast %70 : vector<1x64xf32> to vector<32x64xf32>
    %72 = arith.mulf %60, %71 : vector<32x64xf32>
    %c2_63 = arith.constant 2 : index
    %c0_64 = arith.constant 0 : index
    %73 = vector.load %arg4[%c2_63, %c0_64] : memref<3x64xf32, #tpu.memory_space<vmem>>, vector<1x64xf32>
    %74 = vector.broadcast %73 : vector<1x64xf32> to vector<32x64xf32>
    %75 = arith.addf %72, %74 : vector<32x64xf32>
    %cst_65 = arith.constant 0.000000e+00 : f32
    %76 = vector.broadcast %cst_65 : f32 to vector<32x64xf32>
    %77 = arith.maximumf %75, %76 : vector<32x64xf32>
    %78 = vector.shape_cast %77 : vector<32x64xf32> to vector<2x16x64xf32>
    %cst_66 = arith.constant dense<0.000000e+00> : vector<2x64xf32>
    %79 = vector.multi_reduction <add>, %78, %cst_66 [1] : vector<2x16x64xf32> to vector<2x64xf32>
    %cst_67 = arith.constant 1.600000e+01 : f32
    %80 = vector.broadcast %cst_67 : f32 to vector<2x64xf32>
    %81 = arith.divf %79, %80 : vector<2x64xf32>
    %c0_68 = arith.constant 0 : index
    %c0_69 = arith.constant 0 : index
    %82 = vector.load %arg5[%c0_68, %c0_69] : memref<65x4xf32, #tpu.memory_space<vmem>>, vector<64x4xf32>
    %c64 = arith.constant 64 : index
    %c0_70 = arith.constant 0 : index
    %83 = vector.load %arg5[%c64, %c0_70] : memref<65x4xf32, #tpu.memory_space<vmem>>, vector<1x4xf32>
    %cst_71 = arith.constant dense<0.000000e+00> : vector<2x4xf32>
    %84 = tpu.matmul %81, %82, %cst_71 {dimension_numbers = #tpu.dot_dimension_numbers<[1], [0], [0], [1], [0, 0, 1, 1], [], []>} : vector<2x64xf32>, vector<64x4xf32>, vector<2x4xf32> -> vector<2x4xf32>
    %85 = vector.broadcast %83 : vector<1x4xf32> to vector<2x4xf32>
    %86 = arith.addf %84, %85 : vector<2x4xf32>
    %c0_72 = arith.constant 0 : index
    %c0_73 = arith.constant 0 : index
    %87 = vector.load %arg6[%c0_72, %c0_73] : memref<2x4xf32, #tpu.memory_space<vmem>>, vector<2x4xf32>
    tpu.vector_store %arg6[%c0_72, %c0_73], %86 {strides = array<i32>} : memref<2x4xf32, #tpu.memory_space<vmem>>, vector<2x4xf32>,
    return
  }
}

</mosaic_0001>

<bundles_post_ra>
// kernel: tpu_custom_call.1
= control target key start
LH: loop header
LB: loop body
LE: loop exit
PB: predicated region body
PF: predicated region fallthrough
CT: control target
= control target key end

     0   :  { %vm34_vm0 = vcmask 64512   ;;  %vm29_vm1 = vcmask 57344   ;;  %v773_v2 = vmov 0.0   ;;  %vm118_vm2 = vcmask 1043456   ;;  %s970_s0 = inlined_call_operand.vmem [shape: f32[2,16,8], index: 0, kind: input, shape index: {}]   ;;  %s971_s1 = inlined_call_operand.vmem [shape: bf16[24,32], index: 1, kind: input, shape index: {}]   ;;  %s972_s2 = inlined_call_operand.vmem [shape: f32[3,32], index: 2, kind: input, shape index: {}]   ;;  %s973_s3 = inlined_call_operand.vmem [shape: bf16[96,64], index: 3, kind: input, shape index: {}]   ;;  %s974_s4 = inlined_call_operand.vmem [shape: f32[3,64], index: 4, kind: input, shape index: {}]   ;;  %s975_s5 = inlined_call_operand.vmem [shape: f32[65,4], index: 5, kind: input, shape index: {}]   ;;  %s976_s6 = inlined_call_operand.hbm [shape: f32[2,4], index: 6, kind: output, shape index: {}]  }
   0x1   :  { %v25_v0 = vld [vmem:[%s970_s0] sm:$0xff]  ;;  %v26_v1 = vld [vmem:[%s970_s0 + $0x8] sm:$0xff]  ;;  %32 = vst.msk [vmem:[#allocation2 + $0x11] sm:$0x1] %vm29_vm1, %v773_v2  ;;  %30 = vst.msk [vmem:[#allocation2] sm:$0x1] %vm29_vm1, %v773_v2 }
   0x2   :  { %35 = vst.msk [vmem:[#allocation2 + $0x1] sm:$0xff] %vm34_vm0, %v25_v0  ;;  %36 = vst.msk [vmem:[#allocation2 + $0x9] sm:$0xff] %vm34_vm0, %v26_v1  ;;  %v27_v3 = vld [vmem:[%s970_s0 + $0x10] sm:$0xff]  ;;  %v28_v4 = vld [vmem:[%s970_s0 + $0x18] sm:$0xff]  ;;  %s774_s0 = smov 8  }
   0x3   :  { %31 = vst.msk [vmem:[#allocation2 + $0x18] sm:$0x1] %vm29_vm1, %v773_v2  ;;  %33 = vst.msk [vmem:[#allocation2 + $0x29] sm:$0x1] %vm29_vm1, %v773_v2  ;;  %v737_v5 = vld [vmem:[%s971_s1] sm:$0xff]  }
   0x4   :  { %37 = vst.msk [vmem:[#allocation2 + $0x19] sm:$0xff] %vm34_vm0, %v27_v3  ;;  %38 = vst.msk [vmem:[#allocation2 + $0x21] sm:$0xff] %vm34_vm0, %v28_v4  ;;  %v738_v6 = vld [vmem:[%s971_s1 + $0x8] ss:$0 sps:$4 sm:$0xff]   ;;  %633 = vmatprep.subr.bf16.mxu0 %v737_v5  ;;  %s775_s1 = smov 16  }
   0x5   :  { %634 = vmatpush3.bf16.msra.mxu0 %v737_v5  ;;  %v120_v7 = vsel %vm118_vm2, %v738_v6, 0 }
   0x6   :  { %688 = vmatprep.subr.msk.bf16.mxu0 %vm118_vm2, %v738_v6 }
   0x9   :  { %v43_v8 = vld [vmem:[#allocation2 + $0x1] sm:$0xff]  ;;  %v44_v9 = vld [vmem:[#allocation2 + $0x9] sm:$0xff]  ;;  %636 = vmatpush3.bf16.msra.mxu0 %v120_v7 }
   0xa   :  { %v47_v10 = vld [vmem:[#allocation2 + $0x2] sm:$0xff]  ;;  %v697_v11 = vpack.i.bf16 %v44_v9, %v43_v8  ;;  %v48_v12 = vld [vmem:[#allocation2 + $0xa] sm:$0xff] }
   0xb   :  { %v45_v13 = vld [vmem:[#allocation2 + $0x19] sm:$0xff]  ;;  %v46_v14 = vld [vmem:[#allocation2 + $0x21] sm:$0xff]  ;;  %v707_v15 = vpack.i.bf16 %v48_v12, %v47_v10 }
   0xc   :  { %v49_v16 = vld [vmem:[#allocation2 + $0x1a] sm:$0xff]  ;;  %v50_v17 = vld [vmem:[#allocation2 + $0x22] sm:$0xff]  ;;  %698 = vrot.lane.b32.xlu0 %v697_v11, %s774_s0  ;;  %v702_v18 = vpack.i.bf16 %v46_v14, %v45_v13 }
   0xd   :  { %708 = vrot.lane.b32.xlu1 %v707_v15, %s775_s1  ;;  %v712_v19 = vpack.i.bf16 %v50_v17, %v49_v16 }
   0xe   :  { %11 = vsyncpa [#allocation5], 0  ;;  %v39_v21 = vld [vmem:[#allocation2] sm:$0xff]  ;;  %v40_v22 = vld [vmem:[#allocation2 + $0x8] sm:$0xff]  ;;  %vm87_vm3 = vcmask 130048   ;;  %vm111_vm4 = vcmask 195584  }
   0xf   :  { %v41_v30 = vld [vmem:[#allocation2 + $0x18] sm:$0xff]  ;;  %v42_v31 = vld [vmem:[#allocation2 + $0x20] sm:$0xff]  ;;  %vm234_vm5 = vcmask 253952   ;;  %v739_v46 = vld [vmem:[%s973_s3] sm:$0xff]   ;;  %vm171_vm6 = vcmask 261120   ;;  %s776_s26 = smov 32  }
  0x10   :  { %703 = vrot.lane.b32.xlu0 %v702_v18, %s774_s0  ;;  %238 = vst.msk [vmem:[#allocation3 + $0x29] sm:$0x1] %vm234_vm5, %v773_v2  ;;  %235 = vst.msk [vmem:[#allocation3] sm:$0x1] %vm234_vm5, %v773_v2  ;;  %v740_v47 = vld [vmem:[%s973_s3 + $0x8] sm:$0xff]   ;;  %641 = vmatprep.subr.bf16.mxu1 %v739_v46  ;;  %v741_v48 = vld [vmem:[%s973_s3 + $0x10] sm:$0xff]  }
  0x11   :  { %713 = vrot.lane.b32.xlu1 %v712_v19, %s775_s1  ;;  %236 = vst.msk [vmem:[#allocation3 + $0x18] sm:$0x1] %vm234_vm5, %v773_v2  ;;  %237 = vst.msk [vmem:[#allocation3 + $0x11] sm:$0x1] %vm234_vm5, %v773_v2  ;;  %642 = vmatpush3.bf16.msra.mxu1 %v739_v46  ;;  %v742_v49 = vld [vmem:[%s973_s3 + $0x18] sm:$0xff]   ;;  %s777_s27 = smov 64  }
  0x12   :  { %643 = vmatprep.subr.bf16.mxu1 %v740_v47  ;;  %v594_v50 = vld [vmem:[%s972_s2] ss:$0 sm:$0xff]  ;;  %vm291_vm7 = vcmask 523264   ;;  %vm351_vm8 = vcmask 785408   ;;  %vm779_vm9 = vmmov 0   ;;  %vm504_vm10 = vcmask 1041409  }
  0x13   :  { %s780_s24 = smov [#allocation4]   ;;  %vm578_vm11 = vcmask 25600  }
  0x15   :  { %644 = vmatpush3.bf16.msra.mxu1 %v740_v47 }
  0x16   :  { %645 = vmatprep.subr.bf16.mxu1 %v741_v48 }
  0x19   :  { %646 = vmatpush3.bf16.msra.mxu1 %v741_v48 }
  0x1a   :  { %647 = vmatprep.subr.bf16.mxu1 %v742_v49 }
  0x1d   :  { %648 = vmatpush3.bf16.msra.mxu1 %v742_v49 }
  0x7e   :  { %v699_v20 = vpop.permute.xlu0 %698 }
  0x7f   :  { %v701_v23 = vunpack.i.h.bf16 %v699_v20  ;;  %v700_v24 = vunpack.i.l.bf16 %v699_v20  ;;  %v709_v25 = vpop.permute.xlu1 %708 }
  0x80   :  { %v711_v26 = vunpack.i.h.bf16 %v709_v25  ;;  %v710_v27 = vunpack.i.l.bf16 %v709_v25 }
  0x81   :  { %v83_v28 = vsel %vm34_vm0, %v39_v21, %v700_v24  ;;  %v84_v29 = vsel %vm34_vm0, %v40_v22, %v701_v23 }
  0x82   :  { %v704_v32 = vpop.permute.xlu0 %703  ;;  %v88_v33 = vsel %vm87_vm3, %v83_v28, %v710_v27  ;;  %v89_v34 = vsel %vm87_vm3, %v84_v29, %v711_v26 }
  0x83   :  { %v706_v35 = vunpack.i.h.bf16 %v704_v32  ;;  %v705_v36 = vunpack.i.l.bf16 %v704_v32  ;;  %v714_v37 = vpop.permute.xlu1 %713  ;;  %v92_v38 = vpack.c.bf16 %v89_v34, %v88_v33  ;;  %v213_v33 = vlaneseq }
  0x84   :  { %v716_v39 = vunpack.i.h.bf16 %v714_v37  ;;  %v715_v40 = vunpack.i.l.bf16 %v714_v37 }
  0x85   :  { %v86_v41 = vsel %vm34_vm0, %v42_v31, %v706_v35  ;;  %v85_v42 = vsel %vm34_vm0, %v41_v30, %v705_v36  ;;  %637 = vmatprep.mubr.msk.bf16.mxu0 %vm111_vm4, %v92_v38  ;;  %v877_v34 = vshrl.u32 %v213_v33, 7  ;;  %v211_v35 = vld [vmem:[%s972_s2 + $0x1] sm:$0x1]  ;;  %v778_v33 = vmov 0.0|0.0  }
  0x86   :  { %v90_v43 = vsel %vm87_vm3, %v85_v42, %v715_v40  ;;  %v91_v44 = vsel %vm87_vm3, %v86_v41, %v716_v39  ;;  %v599_v40 = vld [vmem:[%s972_s2 + $0x2] ss:$0 sm:$0xff]  ;;  %676 = vmatprep.subr.bf16.mxu0 %v778_v33  ;;  %s586_s2 = sshll.u32 %s780_s24, 4  ;;  %s587_s2 = int_to_ptr.vmem [resolvable:$true] %s586_s2 }
  0x87   :  { %v93_v45 = vpack.c.bf16 %v91_v44, %v90_v43  ;;  %v215_v36 = vsub.s32 0, %v877_v34  ;;  %s749_s25 = scalar_lea.vmem %s587_s2, 32  ;;  %p754_p1 = scmp.lt.s32.totalorder %s587_s2, %s587_s2 }
  0x88   :  { %p750_p0 = scmp.ne.s32.totalorder %s587_s2, %s749_s25  ;;  %p755_p2 = scmp.lt.s32.totalorder %s749_s25, %s749_s25 }
  0x89   :  { %638 = vmatmul.mubr.msk.bf16.vlgmr.msra.gmra.mrb[0].mxu0 %vm111_vm4, %v93_v45 }
  0x8a   :  { %673 = vmatprep.mubr.msk.f32.mxu0 %vm779_vm9, %v773_v2  ;;  %p756_p3 = por %p755_p2, %p754_p1 }
  0x8c   :  { %p757_p4 = pnand %p756_p3, %p750_p0 }
 0x15c   :  { %v639_v51 = vpop.f32.mrb[0].mxu0 }
 0x15d   :  { %v156_v52 = vpop.f32.mrb[1].mxu0  ;;  %v165_v56 = vadd.f32 %v639_v51, %v594_v50 }
 0x15e   :  { %v157_v53 = vadd.f32 %v594_v50, %v156_v52  ;;  %v640_v54 = vpop.f32.mrb[2].mxu0 }
 0x15f   :  { %v159_v55 = vpop.f32.mrb[3].mxu0  ;;  %v168_v59 = vadd.f32 %v640_v54, %v594_v50  ;;  %v175_v62 = vsel %vm171_vm6, %v165_v56, 0.0  ;;  %v744_v54 = vld [vmem:[%s973_s3 + $0x28] sm:$0xff]  }
 0x160   :  { %v160_v57 = vadd.f32 %v594_v50, %v159_v55  ;;  %v172_v58 = vsel %vm171_vm6, %v157_v53, 0.0 }
 0x161   :  { %v177_v0 = vsel %vm171_vm6, %v168_v59, 0.0 }
 0x162   :  { %v173_v60 = vsel %vm171_vm6, %v160_v57, 0.0 }
 0x163   :  { %v174_v61 = vadd.f32 %v173_v60, %v172_v58 }
 0x165   :  { %v176_v63 = vadd.f32 %v175_v62, %v174_v61 }
 0x167   :  { %v178_v1 = vadd.f32 %v177_v0, %v176_v63 }
 0x169   :  { %v179_v3 = vrot.slane %v178_v1, 4 }
 0x16b   :  { %v180_v4 = vadd.f32 %v179_v3, %v178_v1 }
 0x16d   :  { %v181_v5 = vrot.slane %v180_v4, 2 }
 0x16f   :  { %v182_v6 = vadd.f32 %v181_v5, %v180_v4 }
 0x171   :  { %v183_v7 = vrot.slane %v182_v6, 1 }
 0x173   :  { %v184_v8 = vadd.f32 %v183_v7, %v182_v6 }
 0x175   :  { %v186_v9 = vmul.f32 0.03125, %v184_v8 }
 0x177   :  { %v187_v10 = vsub.f32 %v157_v53, %v186_v9  ;;  %v188_v11 = vsub.f32 %v160_v57, %v186_v9  ;;  %v189_v12 = vsub.f32 %v165_v56, %v186_v9  ;;  %v190_v13 = vsub.f32 %v168_v59, %v186_v9  ;;  %v743_v53 = vld [vmem:[%s973_s3 + $0x20] sm:$0xff]  }
 0x178   :  { %649 = vmatprep.subr.bf16.mxu1 %v743_v53 }
 0x179   :  { %v191_v14 = vmul.f32 %v187_v10, %v187_v10  ;;  %v192_v15 = vmul.f32 %v188_v11, %v188_v11  ;;  %v193_v16 = vmul.f32 %v189_v12, %v189_v12  ;;  %v194_v17 = vmul.f32 %v190_v13, %v190_v13  ;;  %650 = vmatpush3.bf16.msra.mxu1 %v743_v53 }
 0x17a   :  { %651 = vmatprep.subr.bf16.mxu1 %v744_v54 }
 0x17b   :  { %v195_v18 = vsel %vm171_vm6, %v191_v14, 0.0  ;;  %v196_v19 = vsel %vm171_vm6, %v192_v15, 0.0  ;;  %v198_v21 = vsel %vm171_vm6, %v193_v16, 0.0  ;;  %v200_v23 = vsel %vm171_vm6, %v194_v17, 0.0 }
 0x17c   :  { %v197_v20 = vadd.f32 %v196_v19, %v195_v18 }
 0x17d   :  { %652 = vmatpush3.bf16.msra.mxu1 %v744_v54 }
 0x17e   :  { %v199_v22 = vadd.f32 %v198_v21, %v197_v20 }
 0x180   :  { %v201_v24 = vadd.f32 %v200_v23, %v199_v22 }
 0x182   :  { %v202_v25 = vrot.slane %v201_v24, 4 }
 0x184   :  { %v203_v26 = vadd.f32 %v202_v25, %v201_v24 }
 0x186   :  { %v204_v27 = vrot.slane %v203_v26, 2 }
 0x188   :  { %v205_v28 = vadd.f32 %v204_v27, %v203_v26 }
 0x18a   :  { %v206_v29 = vrot.slane %v205_v28, 1 }
 0x18c   :  { %v207_v30 = vadd.f32 %v206_v29, %v205_v28 }
 0x18e   :  { %v208_v31 = vmul.f32 0.03125, %v207_v30  ;;  %v489_v30 = vld [vmem:[%s975_s5] sm:$0xff] }
 0x190   :  { %v209_v32 = vadd.f32 1e-05, %v208_v31  ;;  %v490_v31 = vld [vmem:[%s975_s5 + $0x8] sm:$0xff] }
 0x192   :  { %745 = vrsqrt.f32 %v209_v32  ;;  %v677_v32 = vpack.c.bf16 %v490_v31, %v489_v30  ;;  %v609_v31 = vld [vmem:[%s974_s4 + $0x2] ss:$0 sm:$0xff] }
 0x194   :  { %678 = vmatpush3.bf16.msra.mxu0 %v677_v32 }
 0x195   :  { %679 = vmatprep.subr.bf16.mxu0 %v778_v33 }
 0x19c   :  { %v746_v37 = vpop.eup %745 }
 0x19d   :  { %v212_v38 = vmul.f32 %v746_v37, %v211_v35  ;;  %v491_v35 = vld [vmem:[%s975_s5 + $0x10] sm:$0xff]  ;;  %v492_v37 = vld [vmem:[%s975_s5 + $0x18] sm:$0xff] }
 0x19f   :  { %v216_v39 = vrot.slane %v212_v38, %v215_v36  ;;  %v680_v38 = vpack.c.bf16 %v492_v37, %v491_v35 }
 0x1a1   :  { %v217_v41 = vmul.f32 %v216_v39, %v187_v10  ;;  %v218_v42 = vmul.f32 %v216_v39, %v188_v11  ;;  %v219_v43 = vmul.f32 %v216_v39, %v189_v12  ;;  %v220_v44 = vmul.f32 %v216_v39, %v190_v13  ;;  %v493_v39 = vld [vmem:[%s975_s5 + $0x20] sm:$0xff]  ;;  %681 = vmatpush3.bf16.msra.mxu0 %v680_v38 }
 0x1a2   :  { %682 = vmatprep.subr.bf16.mxu0 %v778_v33 }
 0x1a3   :  { %v226_v45 = vadd.f32 %v599_v40, %v217_v41  ;;  %v227_v46 = vadd.f32 %v599_v40, %v218_v42  ;;  %v228_v47 = vadd.f32 %v599_v40, %v219_v43  ;;  %v229_v48 = vadd.f32 %v599_v40, %v220_v44  ;;  %v494_v40 = vld [vmem:[%s975_s5 + $0x28] sm:$0xff]  ;;  %v495_v42 = vld [vmem:[%s975_s5 + $0x30] sm:$0xff]  ;;  %v496_v43 = vld [vmem:[%s975_s5 + $0x38] sm:$0xff] }
 0x1a4   :  { %v683_v41 = vpack.c.bf16 %v494_v40, %v493_v39  ;;  %v686_v44 = vpack.c.bf16 %v496_v43, %v495_v42 }
 0x1a5   :  { %v230_v49 = vmax.f32 %v226_v45, 0.0  ;;  %v231_v50 = vmax.f32 %v227_v46, 0.0  ;;  %v232_v51 = vmax.f32 %v228_v47, 0.0  ;;  %v233_v52 = vmax.f32 %v229_v48, 0.0  ;;  %v600_v45 = vld [vmem:[%s974_s4] ss:$0 sm:$0xff] }
 0x1a6   :  { %684 = vmatpush3.bf16.msra.mxu0 %v683_v41 }
 0x1a7   :  { %239 = vst.msk [vmem:[#allocation3 + $0x1] sm:$0xff] %vm171_vm6, %v230_v49  ;;  %240 = vst.msk [vmem:[#allocation3 + $0x9] sm:$0xff] %vm171_vm6, %v231_v50  ;;  %685 = vmatprep.subr.bf16.mxu0 %v778_v33 }
 0x1a8   :  { %241 = vst.msk [vmem:[#allocation3 + $0x19] sm:$0xff] %vm171_vm6, %v232_v51  ;;  %242 = vst.msk [vmem:[#allocation3 + $0x21] sm:$0xff] %vm171_vm6, %v233_v52 }
 0x1aa   :  { %687 = vmatpush3.bf16.msra.mxu0 %v686_v44 }
 0x1ae   :  { %v247_v57 = vld [vmem:[#allocation3 + $0x1] sm:$0xff]  ;;  %v248_v59 = vld [vmem:[#allocation3 + $0x9] sm:$0xff] }
 0x1af   :  { %v249_v55 = vld [vmem:[#allocation3 + $0x19] sm:$0xff]  ;;  %v250_v56 = vld [vmem:[#allocation3 + $0x21] sm:$0xff]  ;;  %v717_v60 = vpack.i.bf16 %v248_v59, %v247_v57  ;;  %v252_v0 = vld [vmem:[#allocation3 + $0xa] sm:$0xff] }
 0x1b0   :  { %v722_v58 = vpack.i.bf16 %v250_v56, %v249_v55  ;;  %v253_v61 = vld [vmem:[#allocation3 + $0x1a] sm:$0xff]  ;;  %v254_v62 = vld [vmem:[#allocation3 + $0x22] sm:$0xff] }
 0x1b1   :  { %v251_v63 = vld [vmem:[#allocation3 + $0x2] sm:$0xff]  ;;  %718 = vrot.lane.b32.xlu0 %v717_v60, %s776_s26  ;;  %v732_v1 = vpack.i.bf16 %v254_v62, %v253_v61  ;;  %v245_v11 = vld [vmem:[#allocation3 + $0x18] sm:$0xff] }
 0x1b2   :  { %723 = vrot.lane.b32.xlu1 %v722_v58, %s776_s26  ;;  %v727_v3 = vpack.i.bf16 %v252_v0, %v251_v63  ;;  %v246_v12 = vld [vmem:[#allocation3 + $0x20] sm:$0xff]  ;;  %v244_v21 = vld [vmem:[#allocation3 + $0x8] sm:$0xff] }
 0x1b3   :  { %v243_v20 = vld [vmem:[#allocation3] sm:$0xff] }
 0x1b5   :  { %728 = vrot.lane.b32.xlu0 %v727_v3, %s777_s27 }
 0x1b6   :  { %733 = vrot.lane.b32.xlu1 %v732_v1, %s777_s27 }
 0x223   :  { %v719_v5 = vpop.permute.xlu0 %718 }
 0x224   :  { %v724_v4 = vpop.permute.xlu1 %723  ;;  %v721_v8 = vunpack.i.h.bf16 %v719_v5  ;;  %v720_v9 = vunpack.i.l.bf16 %v719_v5 }
 0x225   :  { %v726_v6 = vunpack.i.h.bf16 %v724_v4  ;;  %v725_v7 = vunpack.i.l.bf16 %v724_v4 }
 0x226   :  { %v287_v24 = vsel %vm171_vm6, %v243_v20, %v720_v9  ;;  %v288_v25 = vsel %vm171_vm6, %v244_v21, %v721_v8 }
 0x227   :  { %v729_v15 = vpop.permute.xlu0 %728  ;;  %v289_v16 = vsel %vm171_vm6, %v245_v11, %v725_v7  ;;  %v290_v17 = vsel %vm171_vm6, %v246_v12, %v726_v6 }
 0x228   :  { %v734_v10 = vpop.permute.xlu1 %733  ;;  %v731_v18 = vunpack.i.h.bf16 %v729_v15  ;;  %v730_v19 = vunpack.i.l.bf16 %v729_v15 }
 0x229   :  { %v736_v13 = vunpack.i.h.bf16 %v734_v10  ;;  %v735_v14 = vunpack.i.l.bf16 %v734_v10 }
 0x22a   :  { %v292_v27 = vsel %vm291_vm7, %v287_v24, %v730_v19  ;;  %v293_v28 = vsel %vm291_vm7, %v288_v25, %v731_v18 }
 0x22b   :  { %v294_v22 = vsel %vm291_vm7, %v289_v16, %v735_v14  ;;  %v295_v23 = vsel %vm291_vm7, %v290_v17, %v736_v13  ;;  %v296_v29 = vpack.c.bf16 %v293_v28, %v292_v27  ;;  %v445_v27 = vld [vmem:[%s974_s4 + $0x1] sm:$0x1] }
 0x22c   :  { %v297_v26 = vpack.c.bf16 %v295_v23, %v294_v22 }
 0x22d   :  { %653 = vmatprep.mubr.msk.bf16.mxu1 %vm351_vm8, %v296_v29 }
 0x22e   :  { %654 = vmatmul.mubr.msk.bf16.vlgmr.msra.gmra.mrb[0].mxu1 %vm351_vm8, %v297_v26 }
 0x301   :  { %v655_v2 = vpop.f32.mrb[0].mxu1 }
 0x302   :  { %v392_v46 = vpop.f32.mrb[1].mxu1  ;;  %v401_v50 = vadd.f32 %v655_v2, %v600_v45 }
 0x303   :  { %v393_v47 = vadd.f32 %v600_v45, %v392_v46  ;;  %v656_v48 = vpop.f32.mrb[2].mxu1 }
 0x304   :  { %v395_v49 = vpop.f32.mrb[3].mxu1  ;;  %v404_v53 = vadd.f32 %v656_v48, %v600_v45  ;;  %v410_v56 = vsel %vm291_vm7, %v401_v50, 0.0 }
 0x305   :  { %v396_v51 = vadd.f32 %v600_v45, %v395_v49  ;;  %v407_v52 = vsel %vm291_vm7, %v393_v47, 0.0 }
 0x306   :  { %v412_v58 = vsel %vm291_vm7, %v404_v53, 0.0 }
 0x307   :  { %v408_v54 = vsel %vm291_vm7, %v396_v51, 0.0 }
 0x308   :  { %v409_v55 = vadd.f32 %v408_v54, %v407_v52 }
 0x30a   :  { %v411_v57 = vadd.f32 %v410_v56, %v409_v55 }
 0x30c   :  { %v413_v59 = vadd.f32 %v412_v58, %v411_v57 }
 0x30e   :  { %v414_v60 = vrot.slane %v413_v59, 4 }
 0x310   :  { %v415_v61 = vadd.f32 %v414_v60, %v413_v59 }
 0x312   :  { %v416_v62 = vrot.slane %v415_v61, 2 }
 0x314   :  { %v417_v63 = vadd.f32 %v416_v62, %v415_v61 }
 0x316   :  { %v418_v0 = vrot.slane %v417_v63, 1 }
 0x318   :  { %v419_v1 = vadd.f32 %v418_v0, %v417_v63  ;;  %v610_v0 = vld [vmem:[%s975_s5 + $0x40] ss:$0 sm:$0xff] }
 0x31a   :  { %v420_v3 = vmul.f32 0.03125, %v419_v1 }
 0x31c   :  { %v421_v4 = vsub.f32 %v393_v47, %v420_v3  ;;  %v422_v5 = vsub.f32 %v396_v51, %v420_v3  ;;  %v423_v6 = vsub.f32 %v401_v50, %v420_v3  ;;  %v424_v7 = vsub.f32 %v404_v53, %v420_v3 }
 0x31e   :  { %v425_v8 = vmul.f32 %v421_v4, %v421_v4  ;;  %v426_v9 = vmul.f32 %v422_v5, %v422_v5  ;;  %v427_v10 = vmul.f32 %v423_v6, %v423_v6  ;;  %v428_v11 = vmul.f32 %v424_v7, %v424_v7 }
 0x320   :  { %v429_v12 = vsel %vm291_vm7, %v425_v8, 0.0  ;;  %v430_v13 = vsel %vm291_vm7, %v426_v9, 0.0  ;;  %v432_v15 = vsel %vm291_vm7, %v427_v10, 0.0  ;;  %v434_v17 = vsel %vm291_vm7, %v428_v11, 0.0 }
 0x321   :  { %v431_v14 = vadd.f32 %v430_v13, %v429_v12 }
 0x323   :  { %v433_v16 = vadd.f32 %v432_v15, %v431_v14 }
 0x325   :  { %v435_v18 = vadd.f32 %v434_v17, %v433_v16 }
 0x327   :  { %v436_v19 = vrot.slane %v435_v18, 4 }
 0x329   :  { %v437_v20 = vadd.f32 %v436_v19, %v435_v18 }
 0x32b   :  { %v438_v21 = vrot.slane %v437_v20, 2 }
 0x32d   :  { %v439_v22 = vadd.f32 %v438_v21, %v437_v20 }
 0x32f   :  { %v440_v23 = vrot.slane %v439_v22, 1 }
 0x331   :  { %v441_v24 = vadd.f32 %v440_v23, %v439_v22 }
 0x333   :  { %v442_v25 = vmul.f32 0.03125, %v441_v24 }
 0x335   :  { %v443_v26 = vadd.f32 1e-05, %v442_v25 }
 0x337   :  { %747 = vrsqrt.f32 %v443_v26 }
 0x341   :  { %v748_v28 = vpop.eup %747 }
 0x342   :  { %v446_v29 = vmul.f32 %v748_v28, %v445_v27 }
 0x344   :  { %v450_v30 = vrot.slane %v446_v29, %v215_v36 }
 0x346   :  { %v451_v32 = vmul.f32 %v450_v30, %v421_v4  ;;  %v452_v33 = vmul.f32 %v450_v30, %v422_v5  ;;  %v453_v35 = vmul.f32 %v450_v30, %v423_v6  ;;  %v454_v37 = vmul.f32 %v450_v30, %v424_v7 }
 0x348   :  { %v460_v38 = vadd.f32 %v609_v31, %v451_v32  ;;  %v461_v39 = vadd.f32 %v609_v31, %v452_v33  ;;  %v462_v40 = vadd.f32 %v609_v31, %v453_v35  ;;  %v463_v41 = vadd.f32 %v609_v31, %v454_v37 }
 0x34a   :  { %v464_v42 = vmax.f32 %v460_v38, 0.0  ;;  %v465_v43 = vmax.f32 %v461_v39, 0.0  ;;  %v466_v44 = vmax.f32 %v462_v40, 0.0  ;;  %v467_v45 = vmax.f32 %v463_v41, 0.0 }
 0x34c   :  { %v468_v2 = vsel %vm291_vm7, %v464_v42, 0.0  ;;  %v469_v34 = vsel %vm291_vm7, %v465_v43, 0.0  ;;  %v477_v36 = vsel %vm291_vm7, %v466_v44, 0.0  ;;  %v478_v46 = vsel %vm291_vm7, %v467_v45, 0.0 }
 0x34d   :  { %v470_v47 = vadd.f32 %v469_v34, %v468_v2  ;;  %v479_v48 = vadd.f32 %v478_v46, %v477_v36 }
 0x34f   :  { %v471_v49 = vrot.slane %v470_v47, 4  ;;  %v480_v50 = vrot.slane %v479_v48, 4 }
 0x351   :  { %v472_v51 = vadd.f32 %v471_v49, %v470_v47  ;;  %v481_v52 = vadd.f32 %v480_v50, %v479_v48 }
 0x353   :  { %v473_v53 = vrot.slane %v472_v51, 2  ;;  %v482_v54 = vrot.slane %v481_v52, 2 }
 0x355   :  { %v474_v55 = vadd.f32 %v473_v53, %v472_v51  ;;  %v483_v56 = vadd.f32 %v482_v54, %v481_v52 }
 0x357   :  { %v475_v57 = vrot.slane %v474_v55, 1  ;;  %v484_v58 = vrot.slane %v483_v56, 1 }
 0x359   :  { %v476_v59 = vadd.f32 %v475_v57, %v474_v55  ;;  %v485_v60 = vadd.f32 %v484_v58, %v483_v56 }
 0x35b   :  { %v487_v61 = vmul.f32 0.0625, %v476_v59  ;;  %v488_v62 = vmul.f32 0.0625, %v485_v60 }
 0x35d   :  { %v505_v63 = vsel %vm504_vm10, %v488_v62, %v487_v61 }
 0x35e   :  { %674 = vmatmul.mubr.msk.f32.vlgmr.msra.gmra.mrb[4].mxu0 %vm291_vm7, %v505_v63 }
 0x431   :  { %v574_v1 = vpop.f32.mrb[4].mxu0 }
 0x432   :  { %v575_v3 = vadd.f32 %v610_v0, %v574_v1  ;;  %v675_v4 = vpop.f32.mrb[5].mxu0 }
 0x434   :  { %579 = vst.msk [vmem:[#allocation4] sm:$0x3] %vm578_vm11, %v575_v3 }
 0x435   :  { %760 = shalt.err (!%p757_p4)
}
 0x436   :  { %s761_s3 = scalar_lea.hbm %s976_s6, 32 }
 0x437   :  { %p762_p5 = scmp.ne.s32.totalorder %s976_s6, %s761_s3  ;;  %p765_p6 = scmp.lt.u32.totalorder %s761_s3, %s976_s6 }
 0x439   :  { %p767_p7 = pnand %p765_p6, %p762_p5 }
 0x43b   :  { %770 = shalt.err (!%p767_p7)
}
 0x43c   :  { %589 = dma.vmem_to_hbm [thread:$0]  %s587_s2, 32, %s976_s6, [#allocation5]  }
 0x43d   :  { %771 = dma.done.wait [#allocation5], 32  }
 0x43e   :  { %772 = vsyncadd [#allocation5], 4294967264 }
 0x43f   :  { %593 = vsyncpa [#allocation5], 1 }

</bundles_post_ra>
